<compile_context>
chip_gen: v6e
topology: v6e:2x2x1
jax: 0.10.0
libtpu: 0.0.40
codegen_flags: <defaults>
</compile_context>

<pallas_src>
import functools

import jax
import jax.numpy as jnp
from jax import lax
from jax.experimental import pallas as pl
from jax.experimental.pallas import tpu as pltpu


def _round_up(n, m):
    return ((n + m - 1) // m) * m


def contrastive_kernel(x_ref,
                       wb_ref, bb_ref,      # synthetic backbone linear (wb bf16, bb f32)
                       w1_ref, b1_ref,      # head linear 1
                       w2_ref, b2_ref,      # head linear 2
                       w3_ref, b3_ref,      # head linear 3
                       o_ref,
                       acc_ref):            # (TB, BDp) f32 accumulator scratch
    k = pl.program_id(1)

    @pl.when(k == 0)
    def _():
        acc_ref[...] = jnp.zeros_like(acc_ref)

    # Backbone matmul, K-tiled: accumulate x[:, k*TK:(k+1)*TK] @ wb[k*TK:(k+1)*TK, :]
    acc_ref[...] += jnp.dot(x_ref[...].astype(jnp.bfloat16), wb_ref[...],
                            preferred_element_type=jnp.float32)

    @pl.when(k == pl.num_programs(1) - 1)
    def _():
        # Backbone epilogue: bias + ReLU (f32 on VPU).
        h = jnp.maximum(acc_ref[...] + bb_ref[...], 0.0)

        # contrastive_head == Sequential(Linear, ReLU, Linear, ReLU, Linear, ReLU)
        h = jnp.maximum(
            jnp.dot(h.astype(jnp.bfloat16), w1_ref[...],
                    preferred_element_type=jnp.float32) + b1_ref[...], 0.0)
        h = jnp.maximum(
            jnp.dot(h.astype(jnp.bfloat16), w2_ref[...],
                    preferred_element_type=jnp.float32) + b2_ref[...], 0.0)
        f = jnp.maximum(
            jnp.dot(h.astype(jnp.bfloat16), w3_ref[...],
                    preferred_element_type=jnp.float32) + b3_ref[...], 0.0)

        # F.normalize(features, dim=1): x / max(||x||_2, eps), eps = 1e-12.
        # rsqrt(max(sq, eps^2)) == 1 / max(||x||, eps); rsqrt runs on the EUP slot.
        sq = jnp.sum(f * f, axis=1, keepdims=True)
        inv = lax.rsqrt(jnp.maximum(sq, 1e-24))
        o_ref[...] = (f * inv).astype(o_ref.dtype)


def contrastive_forward(x_nchw, params, *, tb=None, tk=512):
    """x_nchw: [B, C, H, W]. Returns L2-normalized features [B, features_dim] (f32)."""
    B = x_nchw.shape[0]
    x_flat = x_nchw.reshape(B, -1).astype(jnp.float32)   # row-major == torch NCHW flatten
    din = x_flat.shape[1]

    wb, bb, w1, b1, w2, b2, w3, b3 = params
    wb = wb.astype(jnp.bfloat16)
    w1 = w1.astype(jnp.bfloat16)
    w2 = w2.astype(jnp.bfloat16)
    w3 = w3.astype(jnp.bfloat16)
    bb = bb.astype(jnp.float32)
    b1 = b1.astype(jnp.float32)
    b2 = b2.astype(jnp.float32)
    b3 = b3.astype(jnp.float32)

    bd = wb.shape[1]
    md = w1.shape[1]
    fd = w3.shape[1]

    # Lane-pad backbone_dim to a multiple of 128 (zero pad: mathematically exact).
    bdp = _round_up(bd, 128)
    if bdp != bd:
        wb = jnp.pad(wb, ((0, 0), (0, bdp - bd)))
        bb = jnp.pad(bb, ((0, 0), (0, bdp - bd)))
        w1 = jnp.pad(w1, ((0, bdp - bd), (0, 0)))

    # Batch tile: multiple of 8 (f32 sublane); use large tiles for production batches.
    if tb is None:
        tb = 256 if B >= 256 else _round_up(B, 8)
    tb = min(tb, _round_up(B, 8))
    tb = _round_up(tb, 8)
    b_pad = _round_up(B, tb)
    if b_pad != B:
        x_flat = jnp.pad(x_flat, ((0, b_pad - B), (0, 0)))

    # K tile over Din (bounds VMEM for large flatten sizes, e.g. real CNN features).
    tk = min(tk, _round_up(din, 128))
    tk = _round_up(tk, 128)
    din_pad = _round_up(din, tk)
    if din_pad != din:
        x_flat = jnp.pad(x_flat, ((0, 0), (0, din_pad - din)))
        wb = jnp.pad(wb, ((0, din_pad - din), (0, 0)))

    grid = (b_pad // tb, din_pad // tk)

    grid_spec = pltpu.PrefetchScalarGridSpec(
        num_scalar_prefetch=0,
        grid=grid,
        in_specs=[
            pl.BlockSpec((tb, tk), lambda i, k: (i, k)),      # x        (streamed)
            pl.BlockSpec((tk, bdp), lambda i, k: (k, 0)),     # wb       (streamed over K)
            pl.BlockSpec((1, bdp), lambda i, k: (0, 0)),      # bb       (resident)
            pl.BlockSpec((bdp, md), lambda i, k: (0, 0)),     # w1       (resident)
            pl.BlockSpec((1, md), lambda i, k: (0, 0)),       # b1
            pl.BlockSpec((md, md), lambda i, k: (0, 0)),      # w2
            pl.BlockSpec((1, md), lambda i, k: (0, 0)),       # b2
            pl.BlockSpec((md, fd), lambda i, k: (0, 0)),      # w3
            pl.BlockSpec((1, fd), lambda i, k: (0, 0)),       # b3
        ],
        out_specs=pl.BlockSpec((tb, fd), lambda i, k: (i, 0)),
        scratch_shapes=[pltpu.VMEM((tb, bdp), jnp.float32)],
    )

    # VMEM budget (double-buffered streams + resident weights + scratch), with headroom;
    # capped so it still fits v7x's 64 MiB physical VMEM.
    est = (2 * tb * tk * 4                                   # x tile (f32, double-buffered)
           + 2 * tk * bdp * 2                                # wb tile (bf16)
           + 2 * (bdp * md + md * md + md * fd) * 2          # head weights (bf16)
           + 2 * (bdp + 2 * md + fd) * 4                     # biases (f32)
           + 2 * tb * fd * 4                                 # out tile
           + tb * bdp * 4                                    # accumulator scratch
           + tb * (2 * md + fd + bdp) * 4)                   # head intermediates
    vmem_limit = int(min(56 * 2**20, max(2 * est, 16 * 2**20)))

    flops = 2 * b_pad * (din_pad * bdp + bdp * md + md * md + md * fd)
    bytes_accessed = (b_pad * din_pad * 4
                      + (din_pad * bdp + bdp * md + md * md + md * fd) * 2
                      + (bdp + 2 * md + fd) * 4
                      + b_pad * fd * 4)

    out = pl.pallas_call(
        contrastive_kernel,
        out_shape=jax.ShapeDtypeStruct((b_pad, fd), jnp.float32),
        grid_spec=grid_spec,
        compiler_params=pltpu.CompilerParams(
            dimension_semantics=("parallel", "arbitrary"),
            vmem_limit_bytes=vmem_limit),
        cost_estimate=pl.CostEstimate(flops=flops,
                                      transcendentals=b_pad,
                                      bytes_accessed=bytes_accessed),
    )(x_flat, wb, bb, w1, b1, w2, b2, w3, b3)

    return out[:B]


def make_params(key, d_in, backbone_dim, middle_dim, features_dim):
    ks = jax.random.split(key, 8)

    def lin(kw, kb, fan_in, fan_out):
        bound = 1.0 / jnp.sqrt(fan_in)
        w = jax.random.uniform(kw, (fan_in, fan_out), jnp.float32, -bound, bound)
        b = jax.random.uniform(kb, (1, fan_out), jnp.float32, -bound, bound)
        # Weights stored bf16 (halves HBM traffic / VMEM); biases stay f32.
        return w.astype(jnp.bfloat16), b

    wb, bb = lin(ks[0], ks[1], d_in, backbone_dim)
    w1, b1 = lin(ks[2], ks[3], backbone_dim, middle_dim)
    w2, b2 = lin(ks[4], ks[5], middle_dim, middle_dim)
    w3, b3 = lin(ks[6], ks[7], middle_dim, features_dim)
    return (wb, bb, w1, b1, w2, b2, w3, b3)


def reference_forward(x_nchw, params):
    """Pure-JAX reference using the same bf16 weights / f32 accumulation."""
    wb, bb, w1, b1, w2, b2, w3, b3 = params
    x = x_nchw.reshape(x_nchw.shape[0], -1).astype(jnp.float32)

    def lin(h, w, b):
        return jnp.dot(h.astype(jnp.bfloat16), w.astype(jnp.bfloat16),
                       preferred_element_type=jnp.float32) + b.astype(jnp.float32)

    h = jnp.maximum(lin(x, wb, bb), 0.0)
    h = jnp.maximum(lin(h, w1, b1), 0.0)
    h = jnp.maximum(lin(h, w2, b2), 0.0)
    f = jnp.maximum(lin(h, w3, b3), 0.0)
    n = jnp.sqrt(jnp.sum(f * f, axis=1, keepdims=True))
    return f / jnp.maximum(n, 1e-12)


if __name__ == "__main__":
    key = jax.random.PRNGKey(0)
    kx, kp = jax.random.split(key)

    # Small shapes consistent with the module's forward.
    B, C, H, W = 2, 4, 16, 16
    backbone_dim = 64     # synthetic backbone dim (lane-padded to 128 inside the wrapper)
    middle_dim = 256      # module default
    features_dim = 128    # module default

    x = jax.random.normal(kx, (B, C, H, W), jnp.float32)
    params = make_params(kp, C * H * W, backbone_dim, middle_dim, features_dim)

    fwd = jax.jit(functools.partial(contrastive_forward, tk=512))
    out = jax.block_until_ready(fwd(x, params))

    ref = reference_forward(x, params)
    assert out.shape == (B, features_dim)
    assert jnp.allclose(out, ref, atol=5e-3, rtol=5e-3), "mismatch vs reference"
    # rows should be unit-norm (or exactly zero if every ReLU output was zero)
    norms = jnp.linalg.norm(out, axis=1)
    assert bool(jnp.all((jnp.abs(norms - 1.0) < 1e-3) | (norms < 1e-6)))

    print("KERNEL_OK")
</pallas_src>

<mosaic_0001>
module attributes {stable_mosaic.version = 11 : i64} {
  func.func @contrastive_kernel(%arg0: i32, %arg1: i32, %arg2: memref<8x512xf32, #tpu.memory_space<vmem>>, %arg3: memref<512x128xbf16, #tpu.memory_space<vmem>>, %arg4: memref<1x128xf32, #tpu.memory_space<vmem>>, %arg5: memref<128x256xbf16, #tpu.memory_space<vmem>>, %arg6: memref<1x256xf32, #tpu.memory_space<vmem>>, %arg7: memref<256x256xbf16, #tpu.memory_space<vmem>>, %arg8: memref<1x256xf32, #tpu.memory_space<vmem>>, %arg9: memref<256x128xbf16, #tpu.memory_space<vmem>>, %arg10: memref<1x128xf32, #tpu.memory_space<vmem>>, %arg11: memref<8x128xf32, #tpu.memory_space<vmem>>, %arg12: memref<8x128xf32, #tpu.memory_space<vmem>>) attributes {dimension_semantics = [#tpu.dimension_semantics<parallel>, #tpu.dimension_semantics<arbitrary>], iteration_bounds = array<i64: 1, 2>, scalar_prefetch = 0 : i64, scratch_operands = 1 : i64, tpu.core_type = #tpu.core_type<tc>, window_params = [{transform_indices = @transform_0, window_bounds = array<i64: 8, 512>}, {transform_indices = @transform_1, window_bounds = array<i64: 512, 128>}, {pipeline_mode = #tpu.pipeline_mode<synchronous>, transform_indices = @transform_2, window_bounds = array<i64: 1, 128>}, {pipeline_mode = #tpu.pipeline_mode<synchronous>, transform_indices = @transform_3, window_bounds = array<i64: 128, 256>}, {pipeline_mode = #tpu.pipeline_mode<synchronous>, transform_indices = @transform_4, window_bounds = array<i64: 1, 256>}, {pipeline_mode = #tpu.pipeline_mode<synchronous>, transform_indices = @transform_5, window_bounds = array<i64: 256, 256>}, {pipeline_mode = #tpu.pipeline_mode<synchronous>, transform_indices = @transform_6, window_bounds = array<i64: 1, 256>}, {pipeline_mode = #tpu.pipeline_mode<synchronous>, transform_indices = @transform_7, window_bounds = array<i64: 256, 128>}, {pipeline_mode = #tpu.pipeline_mode<synchronous>, transform_indices = @transform_8, window_bounds = array<i64: 1, 128>}, {transform_indices = @transform_9, window_bounds = array<i64: 8, 128>}]} {
    %c0_i32 = arith.constant 0 : i32
    %0 = arith.cmpi eq, %arg1, %c0_i32 : i32
    %1 = arith.extui %0 : i1 to i32
    %c0_i32_0 = arith.constant 0 : i32
    %2 = arith.cmpi ne, %1, %c0_i32_0 : i32
    scf.if %2 {
      %cst_9 = arith.constant 0.000000e+00 : f32
      %13 = vector.broadcast %cst_9 : f32 to vector<8x128xf32>
      %c0_10 = arith.constant 0 : index
      %c0_11 = arith.constant 0 : index
      %14 = vector.load %arg12[%c0_10, %c0_11] : memref<8x128xf32, #tpu.memory_space<vmem>>, vector<8x128xf32>
      tpu.vector_store %arg12[%c0_10, %c0_11], %13 {strides = array<i32>} : memref<8x128xf32, #tpu.memory_space<vmem>>, vector<8x128xf32>,
    } else {
    }
    %c0 = arith.constant 0 : index
    %c0_1 = arith.constant 0 : index
    %3 = vector.load %arg12[%c0, %c0_1] : memref<8x128xf32, #tpu.memory_space<vmem>>, vector<8x128xf32>
    %c0_2 = arith.constant 0 : index
    %c0_3 = arith.constant 0 : index
    %4 = vector.load %arg2[%c0_2, %c0_3] : memref<8x512xf32, #tpu.memory_space<vmem>>, vector<8x512xf32>
    %5 = arith.truncf %4 : vector<8x512xf32> to vector<8x512xbf16>
    %c0_4 = arith.constant 0 : index
    %c0_5 = arith.constant 0 : index
    %6 = vector.load %arg3[%c0_4, %c0_5] : memref<512x128xbf16, #tpu.memory_space<vmem>>, vector<512x128xbf16>
    %cst = arith.constant dense<0.000000e+00> : vector<8x128xf32>
    %7 = tpu.matmul %5, %6, %cst {dimension_numbers = #tpu.dot_dimension_numbers<[1], [0], [0], [1], [0, 0, 1, 1], [], []>} : vector<8x512xbf16>, vector<512x128xbf16>, vector<8x128xf32> -> vector<8x128xf32>
    %8 = arith.addf %3, %7 : vector<8x128xf32>
    %c0_6 = arith.constant 0 : index
    %c0_7 = arith.constant 0 : index
    %9 = vector.load %arg12[%c0_6, %c0_7] : memref<8x128xf32, #tpu.memory_space<vmem>>, vector<8x128xf32>
    tpu.vector_store %arg12[%c0_6, %c0_7], %8 {strides = array<i32>} : memref<8x128xf32, #tpu.memory_space<vmem>>, vector<8x128xf32>,
    %c1_i32 = arith.constant 1 : i32
    %10 = arith.cmpi eq, %arg1, %c1_i32 : i32
    %11 = arith.extui %10 : i1 to i32
    %c0_i32_8 = arith.constant 0 : i32
    %12 = arith.cmpi ne, %11, %c0_i32_8 : i32
    scf.if %12 {
      %c0_9 = arith.constant 0 : index
      %c0_10 = arith.constant 0 : index
      %13 = vector.load %arg12[%c0_9, %c0_10] : memref<8x128xf32, #tpu.memory_space<vmem>>, vector<8x128xf32>
      %c0_11 = arith.constant 0 : index
      %c0_12 = arith.constant 0 : index
      %14 = vector.load %arg4[%c0_11, %c0_12] : memref<1x128xf32, #tpu.memory_space<vmem>>, vector<1x128xf32>
      %15 = vector.broadcast %14 : vector<1x128xf32> to vector<8x128xf32>
      %16 = arith.addf %13, %15 : vector<8x128xf32>
      %cst_13 = arith.constant 0.000000e+00 : f32
      %17 = vector.broadcast %cst_13 : f32 to vector<8x128xf32>
      %18 = arith.maximumf %16, %17 : vector<8x128xf32>
      %19 = arith.truncf %18 : vector<8x128xf32> to vector<8x128xbf16>
      %c0_14 = arith.constant 0 : index
      %c0_15 = arith.constant 0 : index
      %20 = vector.load %arg5[%c0_14, %c0_15] : memref<128x256xbf16, #tpu.memory_space<vmem>>, vector<128x256xbf16>
      %cst_16 = arith.constant dense<0.000000e+00> : vector<8x256xf32>
      %21 = tpu.matmul %19, %20, %cst_16 {dimension_numbers = #tpu.dot_dimension_numbers<[1], [0], [0], [1], [0, 0, 1, 1], [], []>} : vector<8x128xbf16>, vector<128x256xbf16>, vector<8x256xf32> -> vector<8x256xf32>
      %c0_17 = arith.constant 0 : index
      %c0_18 = arith.constant 0 : index
      %22 = vector.load %arg6[%c0_17, %c0_18] : memref<1x256xf32, #tpu.memory_space<vmem>>, vector<1x256xf32>
      %23 = vector.broadcast %22 : vector<1x256xf32> to vector<8x256xf32>
      %24 = arith.addf %21, %23 : vector<8x256xf32>
      %cst_19 = arith.constant 0.000000e+00 : f32
      %25 = vector.broadcast %cst_19 : f32 to vector<8x256xf32>
      %26 = arith.maximumf %24, %25 : vector<8x256xf32>
      %27 = arith.truncf %26 : vector<8x256xf32> to vector<8x256xbf16>
      %c0_20 = arith.constant 0 : index
      %c0_21 = arith.constant 0 : index
      %28 = vector.load %arg7[%c0_20, %c0_21] : memref<256x256xbf16, #tpu.memory_space<vmem>>, vector<256x256xbf16>
      %cst_22 = arith.constant dense<0.000000e+00> : vector<8x256xf32>
      %29 = tpu.matmul %27, %28, %cst_22 {dimension_numbers = #tpu.dot_dimension_numbers<[1], [0], [0], [1], [0, 0, 1, 1], [], []>} : vector<8x256xbf16>, vector<256x256xbf16>, vector<8x256xf32> -> vector<8x256xf32>
      %c0_23 = arith.constant 0 : index
      %c0_24 = arith.constant 0 : index
      %30 = vector.load %arg8[%c0_23, %c0_24] : memref<1x256xf32, #tpu.memory_space<vmem>>, vector<1x256xf32>
      %31 = vector.broadcast %30 : vector<1x256xf32> to vector<8x256xf32>
      %32 = arith.addf %29, %31 : vector<8x256xf32>
      %cst_25 = arith.constant 0.000000e+00 : f32
      %33 = vector.broadcast %cst_25 : f32 to vector<8x256xf32>
      %34 = arith.maximumf %32, %33 : vector<8x256xf32>
      %35 = arith.truncf %34 : vector<8x256xf32> to vector<8x256xbf16>
      %c0_26 = arith.constant 0 : index
      %c0_27 = arith.constant 0 : index
      %36 = vector.load %arg9[%c0_26, %c0_27] : memref<256x128xbf16, #tpu.memory_space<vmem>>, vector<256x128xbf16>
      %cst_28 = arith.constant dense<0.000000e+00> : vector<8x128xf32>
      %37 = tpu.matmul %35, %36, %cst_28 {dimension_numbers = #tpu.dot_dimension_numbers<[1], [0], [0], [1], [0, 0, 1, 1], [], []>} : vector<8x256xbf16>, vector<256x128xbf16>, vector<8x128xf32> -> vector<8x128xf32>
      %c0_29 = arith.constant 0 : index
      %c0_30 = arith.constant 0 : index
      %38 = vector.load %arg10[%c0_29, %c0_30] : memref<1x128xf32, #tpu.memory_space<vmem>>, vector<1x128xf32>
      %39 = vector.broadcast %38 : vector<1x128xf32> to vector<8x128xf32>
      %40 = arith.addf %37, %39 : vector<8x128xf32>
      %cst_31 = arith.constant 0.000000e+00 : f32
      %41 = vector.broadcast %cst_31 : f32 to vector<8x128xf32>
      %42 = arith.maximumf %40, %41 : vector<8x128xf32>
      %43 = arith.mulf %42, %42 : vector<8x128xf32>
      %cst_32 = arith.constant dense<0.000000e+00> : vector<8xf32>
      %44 = vector.multi_reduction <add>, %43, %cst_32 [1] : vector<8x128xf32> to vector<8xf32>
      %45 = vector.shape_cast %44 : vector<8xf32> to vector<8x1xf32>
      %cst_33 = arith.constant 1.000000e-24 : f32
      %46 = vector.broadcast %cst_33 : f32 to vector<8x1xf32>
      %47 = arith.maximumf %45, %46 : vector<8x1xf32>
      %48 = math.rsqrt %47 : vector<8x1xf32>
      %49 = vector.broadcast %48 : vector<8x1xf32> to vector<8x128xf32>
      %50 = arith.mulf %42, %49 : vector<8x128xf32>
      %c0_34 = arith.constant 0 : index
      %c0_35 = arith.constant 0 : index
      %51 = vector.load %arg11[%c0_34, %c0_35] : memref<8x128xf32, #tpu.memory_space<vmem>>, vector<8x128xf32>
      tpu.vector_store %arg11[%c0_34, %c0_35], %50 {strides = array<i32>} : memref<8x128xf32, #tpu.memory_space<vmem>>, vector<8x128xf32>,
    } else {
    }
    return
  }
  func.func @transform_0(%arg0: i32, %arg1: i32) -> (i32, i32) {
    %c0_i32 = arith.constant 0 : i32
    return %arg0, %arg1 : i32, i32
  }
  func.func @transform_1(%arg0: i32, %arg1: i32) -> (i32, i32) {
    %c0_i32 = arith.constant 0 : i32
    %c0_i32_0 = arith.constant 0 : i32
    return %arg1, %c0_i32 : i32, i32
  }
  func.func @transform_2(%arg0: i32, %arg1: i32) -> (i32, i32) {
    %c0_i32 = arith.constant 0 : i32
    %c0_i32_0 = arith.constant 0 : i32
    %c0_i32_1 = arith.constant 0 : i32
    return %c0_i32, %c0_i32_0 : i32, i32
  }
  func.func @transform_3(%arg0: i32, %arg1: i32) -> (i32, i32) {
    %c0_i32 = arith.constant 0 : i32
    %c0_i32_0 = arith.constant 0 : i32
    %c0_i32_1 = arith.constant 0 : i32
    return %c0_i32, %c0_i32_0 : i32, i32
  }
  func.func @transform_4(%arg0: i32, %arg1: i32) -> (i32, i32) {
    %c0_i32 = arith.constant 0 : i32
    %c0_i32_0 = arith.constant 0 : i32
    %c0_i32_1 = arith.constant 0 : i32
    return %c0_i32, %c0_i32_0 : i32, i32
  }
  func.func @transform_5(%arg0: i32, %arg1: i32) -> (i32, i32) {
    %c0_i32 = arith.constant 0 : i32
    %c0_i32_0 = arith.constant 0 : i32
    %c0_i32_1 = arith.constant 0 : i32
    return %c0_i32, %c0_i32_0 : i32, i32
  }
  func.func @transform_6(%arg0: i32, %arg1: i32) -> (i32, i32) {
    %c0_i32 = arith.constant 0 : i32
    %c0_i32_0 = arith.constant 0 : i32
    %c0_i32_1 = arith.constant 0 : i32
    return %c0_i32, %c0_i32_0 : i32, i32
  }
  func.func @transform_7(%arg0: i32, %arg1: i32) -> (i32, i32) {
    %c0_i32 = arith.constant 0 : i32
    %c0_i32_0 = arith.constant 0 : i32
    %c0_i32_1 = arith.constant 0 : i32
    return %c0_i32, %c0_i32_0 : i32, i32
  }
  func.func @transform_8(%arg0: i32, %arg1: i32) -> (i32, i32) {
    %c0_i32 = arith.constant 0 : i32
    %c0_i32_0 = arith.constant 0 : i32
    %c0_i32_1 = arith.constant 0 : i32
    return %c0_i32, %c0_i32_0 : i32, i32
  }
  func.func @transform_9(%arg0: i32, %arg1: i32) -> (i32, i32) {
    %c0_i32 = arith.constant 0 : i32
    %c0_i32_0 = arith.constant 0 : i32
    return %arg0, %c0_i32 : i32, i32
  }
}

</mosaic_0001>

<bundles_post_ra>
// kernel: contrastive_forward.1
= control target key start
LH: loop header
LB: loop body
LE: loop exit
PB: predicated region body
PF: predicated region fallthrough
CT: control target
= control target key end

     0   :  { %s1812_s30 = smov 0   ;;  %s1814_s10 = smov 0   ;;  %s2098_s0 = inlined_call_operand.vmem [shape: f32[8,1024], index: 0, kind: input, shape index: {}]   ;;  %s2099_s1 = inlined_call_operand.vmem [shape: bf16[1024,128], index: 1, kind: input, shape index: {}]   ;;  %s2100_s2 = inlined_call_operand.vmem [shape: f32[1,128], index: 2, kind: input, shape index: {}]   ;;  %s2101_s3 = inlined_call_operand.vmem [shape: bf16[128,256], index: 3, kind: input, shape index: {}]   ;;  %s2102_s4 = inlined_call_operand.vmem [shape: f32[1,256], index: 4, kind: input, shape index: {}]   ;;  %s2103_s5 = inlined_call_operand.vmem [shape: bf16[256,256], index: 5, kind: input, shape index: {}]   ;;  %s2104_s6 = inlined_call_operand.vmem [shape: f32[1,256], index: 6, kind: input, shape index: {}]   ;;  %s2105_s7 = inlined_call_operand.vmem [shape: bf16[256,128], index: 7, kind: input, shape index: {}]   ;;  %s2106_s8 = inlined_call_operand.vmem [shape: f32[1,128], index: 8, kind: input, shape index: {}]   ;;  %s2107_s9 = inlined_call_operand.vmem [shape: f32[8,128], index: 9, kind: output, shape index: {}]  }
   0x1   :  { %s1816_s11 = smov 0  }
   0x2 LB: > { %s28_s12 = sadd.s32 1, %s1754_s10  ;;  %p1414_p0 = scmp.ge.s32.totalorder %s1758_s11, 1  ;;  %s1758_s11 = sphi %s1816_s11, %s19_s11   ;;  %s1754_s10 = sphi %s1814_s10, %s2109_s10   ;;  %s1750_s30 = sphi %s1812_s30, %s2108_s30  }
   0x3   : > { %p29_p1 = scmp.ge.s32.totalorder %s28_s12, 2  ;;  %p317_p2 = scmp.lt.s32.totalorder %s1758_s11, 3 }
   0x5   : > { %s2111_s12 = smov (%p29_p1, %s28_s12), 0  ;;  %p318_p3 = pnand %p1414_p0, %p317_p2 }
   0x6   : > { %s1415_s13 = sshll.u32 (!%p318_p3), %s1750_s30, 2  ;;  %s1417_s14 = sshll.u32 (!%p318_p3), %s1750_s30, 6 }
   0x7   : > { %321 = sbr.rel (%p318_p3) target bundleno = 1056 (0x420), region = 56  ;;  %p364_p4 = scmp.lt.s32.totalorder (!%p318_p3), %s1415_s13, 7 }
   0x8   : > { %p372_p5 = scmp.lt.s32.totalorder (!%p318_p3), %s1417_s14, 127  ;;  %p1419_p6 = scmp.ne.s32.totalorder (!%p318_p3), %s1750_s30, 0 }
   0xc   : > { %s2113_s13 = smov (!%p364_p4, %s1415_s13), 7  ;;  %s2115_s14 = smov (!%p372_p5, %s1417_s14), 127 }
   0xd   : > { %s1416_s15 = sshll.u32 %s2113_s13, 3  ;;  %s1418_s19 = sshll.u32 %s2115_s14, 2 }
   0xe   : > { %s1837_s18 = scalar_lea.vmem %s2098_s0, %s1416_s15  ;;  %s1842_s22 = scalar_lea.vmem %s2099_s1, %s1418_s19 }
   0xf   : > { %385 = sbr.rel (%p1419_p6) target bundleno = 22 (0x16), region = 60 }
  0x14   : > { %v1760_v0 = vmov 0.0  }
  0x15   : > { %386 = vst [vmem:[#allocation2] sm:$0xff] %v1760_v0 }
  0x16 PF: > { %v1614_v1 = vld [vmem:[%s1842_s22 + $0x78] sm:$0xff]   ;;  %v1618_v5 = vld [vmem:[%s1842_s22 + $0x70] sm:$0xff]   ;;  %v1622_v9 = vld [vmem:[%s1842_s22 + $0x68] sm:$0xff]   ;;  %p1452_p7 = scmp.ne.s32.totalorder %s1750_s30, 1 }
  0x17   : > { %v1615_v2 = vld [vmem:[%s1842_s22 + $0xf8] sm:$0xff]   ;;  %1522 = vmatprep.subr.bf16.mxu0 %v1614_v1  ;;  %v1619_v6 = vld [vmem:[%s1842_s22 + $0xf0] sm:$0xff]   ;;  %v1623_v10 = vld [vmem:[%s1842_s22 + $0xe8] sm:$0xff]  }
  0x18   : > { %v1616_v3 = vld [vmem:[%s1842_s22 + $0x38] sm:$0xff]   ;;  %1544 = vmatprep.subr.bf16.mxu1 %v1615_v2  ;;  %v1620_v7 = vld [vmem:[%s1842_s22 + $0x30] sm:$0xff]   ;;  %v1624_v11 = vld [vmem:[%s1842_s22 + $0x28] sm:$0xff]  }
  0x19   : > { %v1617_v4 = vld [vmem:[%s1842_s22 + $0xb8] sm:$0xff]   ;;  %1523 = vmatpush3.bf16.msra.mxu0 %v1616_v3  ;;  %v1621_v8 = vld [vmem:[%s1842_s22 + $0xb0] sm:$0xff]   ;;  %v1625_v12 = vld [vmem:[%s1842_s22 + $0xa8] sm:$0xff]  }
  0x1a   : > { %1545 = vmatpush3.bf16.msra.mxu1 %v1617_v4  ;;  %1524 = vmatprep.subr.bf16.mxu0 %v1618_v5  ;;  %v1626_v13 = vld [vmem:[%s1842_s22 + $0x60] sm:$0xff]   ;;  %v1630_v17 = vld [vmem:[%s1842_s22 + $0x58] sm:$0xff]   ;;  %v1634_v21 = vld [vmem:[%s1842_s22 + $0x50] sm:$0xff]  }
  0x1b   : > { %1546 = vmatprep.subr.bf16.mxu1 %v1619_v6  ;;  %v1627_v14 = vld [vmem:[%s1842_s22 + $0xe0] sm:$0xff]   ;;  %v1631_v18 = vld [vmem:[%s1842_s22 + $0xd8] sm:$0xff]   ;;  %v1635_v22 = vld [vmem:[%s1842_s22 + $0xd0] sm:$0xff]  }
  0x1c   : > { %v1628_v15 = vld [vmem:[%s1842_s22 + $0x20] sm:$0xff]   ;;  %v1632_v19 = vld [vmem:[%s1842_s22 + $0x18] sm:$0xff]   ;;  %v1636_v23 = vld [vmem:[%s1842_s22 + $0x10] sm:$0xff]  }
  0x1d   : > { %1525 = vmatpush3.bf16.msra.mxu0 %v1620_v7  ;;  %v1629_v16 = vld [vmem:[%s1842_s22 + $0xa0] sm:$0xff]   ;;  %v1633_v20 = vld [vmem:[%s1842_s22 + $0x98] sm:$0xff]   ;;  %v1637_v24 = vld [vmem:[%s1842_s22 + $0x90] sm:$0xff]  }
  0x1e   : > { %1547 = vmatpush3.bf16.msra.mxu1 %v1621_v8  ;;  %1526 = vmatprep.subr.bf16.mxu0 %v1622_v9  ;;  %v1638_v25 = vld [vmem:[%s1842_s22 + $0x48] sm:$0xff]   ;;  %v1642_v29 = vld [vmem:[%s1842_s22 + $0x40] sm:$0xff]   ;;  %v391_v34 = vld [vmem:[%s1837_s18 + $0x18] sm:$0xff] }
  0x1f   : > { %1548 = vmatprep.subr.bf16.mxu1 %v1623_v10  ;;  %v1639_v26 = vld [vmem:[%s1842_s22 + $0xc8] sm:$0xff]   ;;  %v1643_v30 = vld [vmem:[%s1842_s22 + $0xc0] sm:$0xff]   ;;  %v395_v37 = vpack.c.bf16 %v391_v34, %v391_v34  ;;  %v390_v39 = vld [vmem:[%s1837_s18 + $0x10] sm:$0xff] }
  0x20   : > { %v1640_v27 = vld [vmem:[%s1842_s22 + $0x8] sm:$0xff]   ;;  %v1644_v31 = vld [vmem:[%s1842_s22] sm:$0xff]   ;;  %v394_v40 = vpack.c.bf16 %v390_v39, %v390_v39 }
  0x21   : > { %1527 = vmatpush3.bf16.msra.mxu0 %v1624_v11  ;;  %v1641_v28 = vld [vmem:[%s1842_s22 + $0x88] sm:$0xff]   ;;  %v1645_v32 = vld [vmem:[%s1842_s22 + $0x80] sm:$0xff]   ;;  %724 = vmatprep.mubr.bf16.mxu1 %v395_v37 }
  0x22   : > { %1549 = vmatpush3.bf16.msra.mxu1 %v1625_v12  ;;  %1528 = vmatprep.subr.bf16.mxu0 %v1626_v13  ;;  %v389_v33 = vld [vmem:[%s1837_s18 + $0x8] sm:$0xff]  ;;  %v388_v35 = vld [vmem:[%s1837_s18] sm:$0xff] }
  0x23   : > { %1550 = vmatprep.subr.bf16.mxu1 %v1627_v14  ;;  %v393_v36 = vpack.c.bf16 %v389_v33, %v389_v33  ;;  %v392_v38 = vpack.c.bf16 %v388_v35, %v388_v35  ;;  %v387_v47 = vld [vmem:[#allocation2] sm:$0xff] }
  0x25   : > { %1529 = vmatpush3.bf16.msra.mxu0 %v1628_v15  ;;  %684 = vmatprep.mubr.bf16.mxu0 %v393_v36 }
  0x26   : > { %1551 = vmatpush3.bf16.msra.mxu1 %v1629_v16  ;;  %1530 = vmatprep.subr.bf16.mxu0 %v1630_v17 }
  0x27   : > { %1552 = vmatprep.subr.bf16.mxu1 %v1631_v18 }
  0x29   : > { %1531 = vmatpush3.bf16.msra.mxu0 %v1632_v19 }
  0x2a   : > { %1553 = vmatpush3.bf16.msra.mxu1 %v1633_v20  ;;  %1532 = vmatprep.subr.bf16.mxu0 %v1634_v21 }
  0x2b   : > { %1554 = vmatprep.subr.bf16.mxu1 %v1635_v22 }
  0x2d   : > { %1533 = vmatpush3.bf16.msra.mxu0 %v1636_v23 }
  0x2e   : > { %1555 = vmatpush3.bf16.msra.mxu1 %v1637_v24  ;;  %1534 = vmatprep.subr.bf16.mxu0 %v1638_v25 }
  0x2f   : > { %1556 = vmatprep.subr.bf16.mxu1 %v1639_v26 }
  0x31   : > { %1535 = vmatpush3.bf16.msra.mxu0 %v1640_v27 }
  0x32   : > { %1557 = vmatpush3.bf16.msra.mxu1 %v1641_v28  ;;  %1536 = vmatprep.subr.bf16.mxu0 %v1642_v29 }
  0x33   : > { %1558 = vmatprep.subr.bf16.mxu1 %v1643_v30 }
  0x35   : > { %1537 = vmatpush3.bf16.msra.mxu0 %v1644_v31 }
  0x36   : > { %1559 = vmatpush3.bf16.msra.mxu1 %v1645_v32 }
  0x38   : > { %685 = vmatmul.mubr.bf16.vlgmr.msra.gmra.mxu0 %v392_v38 }
  0x39   : > { %725 = vmatmul.mubr.bf16.vlgmr.msra.gmra.mxu1 %v394_v40 }
  0xf8   : > { %v1538_v41 = vpop.f32.mrf.mxu0 }
  0xf9   : > { %v1560_v42 = vpop.f32.mrf.mxu1 }
  0xfa   : > { %v1539_v43 = vpop.f32.mrf.mxu0 }
  0xfb   : > { %v1561_v44 = vpop.f32.mrf.mxu1  ;;  %v1540_v45 = vadd.f32 %v1539_v43, %v1538_v41 }
  0xfc   : > { %v1562_v46 = vadd.f32 %v1561_v44, %v1560_v42  ;;  %v1541_v48 = vpop.f32.mrf.mxu0 }
  0xfd   : > { %v1563_v49 = vpop.f32.mrf.mxu1 }
  0xfe   : > { %v727_v50 = vadd.f32 %v1562_v46, %v1540_v45  ;;  %v1542_v51 = vpop.f32.mrf.mxu0  ;;  %737 = sbr.rel (%p1452_p7) target bundleno = 1056 (0x420), region = 64 }
  0xff   : > { %v1564_v52 = vpop.f32.mrf.mxu1 }
 0x100   : > { %v732_v53 = vadd.f32 %v727_v50, %v387_v47 }
 0x102   : > { %733 = vst [vmem:[#allocation2] sm:$0xff] %v732_v53 }
 0x103   : > { %v1646_v54 = vld [vmem:[%s2101_s3 + $0x74] ss:$8 sps:$4 sm:$0xff]   ;;  %v1648_v55 = vld [vmem:[%s2101_s3 + $0x70] ss:$8 sps:$4 sm:$0xff]   ;;  %v1761_v56 = vmov 0   ;;  %v1722_v48 = vld [vmem:[%s2105_s7 + $0x68] sm:$0xff]  }
 0x104   : > { %889 = vmatprep.mubr.bf16.mxu0 %v1761_v56  ;;  %857 = vmatprep.subr.bf16.mxu0 %v1646_v54  ;;  %v1649_v57 = vld [vmem:[%s2101_s3 + $0x64] ss:$8 sps:$4 sm:$0xff]   ;;  %v1651_v58 = vld [vmem:[%s2101_s3 + $0x60] ss:$8 sps:$4 sm:$0xff]   ;;  %v1652_v59 = vld [vmem:[%s2101_s3 + $0x54] ss:$8 sps:$4 sm:$0xff]   ;;  %v767_v56 = vlaneseq }
 0x105   : > { %858 = vmatpush1.bf16.msra.mxu0 %v1648_v55  ;;  %v1654_v60 = vld [vmem:[%s2101_s3 + $0x50] ss:$8 sps:$4 sm:$0xff]   ;;  %v1655_v61 = vld [vmem:[%s2101_s3 + $0x44] ss:$8 sps:$4 sm:$0xff]   ;;  %v1657_v62 = vld [vmem:[%s2101_s3 + $0x40] ss:$8 sps:$4 sm:$0xff]  }
 0x106   : > { %859 = vmatprep.subr.bf16.mxu0 %v1649_v57  ;;  %v1658_v63 = vld [vmem:[%s2101_s3 + $0x34] ss:$8 sps:$4 sm:$0xff]   ;;  %v1672_v1 = vld [vmem:[%s2103_s5 + $0x70] ss:$8 sps:$4 sm:$0xff]   ;;  %v1673_v2 = vld [vmem:[%s2103_s5 + $0x64] ss:$8 sps:$4 sm:$0xff]  }
 0x107   : > { %v1670_v0 = vld [vmem:[%s2103_s5 + $0x74] ss:$8 sps:$4 sm:$0xff]   ;;  %v1660_v3 = vld [vmem:[%s2101_s3 + $0x30] ss:$8 sps:$4 sm:$0xff]   ;;  %v1675_v4 = vld [vmem:[%s2103_s5 + $0x60] ss:$8 sps:$4 sm:$0xff]  }
 0x108   : > { %1106 = vmatprep.subr.bf16.mxu1 %v1670_v0  ;;  %v1661_v5 = vld [vmem:[%s2101_s3 + $0x24] ss:$8 sps:$4 sm:$0xff]   ;;  %v1676_v6 = vld [vmem:[%s2103_s5 + $0x54] ss:$8 sps:$4 sm:$0xff]   ;;  %v1663_v7 = vld [vmem:[%s2101_s3 + $0x20] ss:$8 sps:$4 sm:$0xff]  }
 0x109   : > { %860 = vmatpush1.bf16.msra.mxu0 %v1651_v58  ;;  %1107 = vmatpush1.bf16.msra.mxu1 %v1672_v1  ;;  %v738_v8 = vld [vmem:[#allocation2] sm:$0xff]  ;;  %v1678_v10 = vld [vmem:[%s2103_s5 + $0x50] ss:$8 sps:$4 sm:$0xff]   ;;  %v1664_v11 = vld [vmem:[%s2101_s3 + $0x14] ss:$8 sps:$4 sm:$0xff]   ;;  %v768_v57 = vshrl.u32 %v767_v56, 7 }
 0x10a   : > { %861 = vmatprep.subr.bf16.mxu0 %v1652_v59  ;;  %1108 = vmatprep.subr.bf16.mxu1 %v1673_v2  ;;  %v1453_v9 = vld [vmem:[%s2100_s2] ss:$0 sm:$0xff]  ;;  %v1679_v12 = vld [vmem:[%s2103_s5 + $0x44] ss:$8 sps:$4 sm:$0xff]   ;;  %v1666_v13 = vld [vmem:[%s2101_s3 + $0x10] ss:$8 sps:$4 sm:$0xff]  }
 0x10b   : > { %v746_v14 = vadd.f32 %v1453_v9, %v738_v8  ;;  %v1681_v15 = vld [vmem:[%s2103_s5 + $0x40] ss:$8 sps:$4 sm:$0xff]   ;;  %v1667_v16 = vld [vmem:[%s2101_s3 + $0x4] ss:$8 sps:$4 sm:$0xff]   ;;  %v1682_v17 = vld [vmem:[%s2103_s5 + $0x34] ss:$8 sps:$4 sm:$0xff]  }
 0x10c   : > { %v1669_v18 = vld [vmem:[%s2101_s3] ss:$8 sps:$4 sm:$0xff]   ;;  %v1684_v20 = vld [vmem:[%s2103_s5 + $0x30] ss:$8 sps:$4 sm:$0xff]   ;;  %v1685_v21 = vld [vmem:[%s2103_s5 + $0x24] ss:$8 sps:$4 sm:$0xff]  }
 0x10d   : > { %862 = vmatpush1.bf16.msra.mxu0 %v1654_v60  ;;  %1109 = vmatpush1.bf16.msra.mxu1 %v1675_v4  ;;  %v747_v19 = vmax.f32 %v746_v14, 0.0  ;;  %v1687_v22 = vld [vmem:[%s2103_s5 + $0x20] ss:$8 sps:$4 sm:$0xff]   ;;  %v1688_v24 = vld [vmem:[%s2103_s5 + $0x14] ss:$8 sps:$4 sm:$0xff]   ;;  %v769_v58 = vsub.s32 0, %v768_v57 }
 0x10e   : > { %863 = vmatprep.subr.bf16.mxu0 %v1655_v61  ;;  %1110 = vmatprep.subr.bf16.mxu1 %v1676_v6  ;;  %v1690_v25 = vld [vmem:[%s2103_s5 + $0x10] ss:$8 sps:$4 sm:$0xff]   ;;  %v1691_v26 = vld [vmem:[%s2103_s5 + $0x4] ss:$8 sps:$4 sm:$0xff]   ;;  %v1693_v27 = vld [vmem:[%s2103_s5] ss:$8 sps:$4 sm:$0xff]  }
 0x10f   : > { %v748_v23 = vpack.c.bf16 %v747_v19, %v747_v19  ;;  %v1694_v28 = vld [vmem:[%s2103_s5 + $0xf4] ss:$8 sps:$4 sm:$0xff]   ;;  %v1696_v29 = vld [vmem:[%s2103_s5 + $0xf0] ss:$8 sps:$4 sm:$0xff]   ;;  %v1697_v30 = vld [vmem:[%s2103_s5 + $0xe4] ss:$8 sps:$4 sm:$0xff]  }
 0x110   : > { %v1699_v31 = vld [vmem:[%s2103_s5 + $0xe0] ss:$8 sps:$4 sm:$0xff]   ;;  %v1700_v32 = vld [vmem:[%s2103_s5 + $0xd4] ss:$8 sps:$4 sm:$0xff]   ;;  %v1702_v33 = vld [vmem:[%s2103_s5 + $0xd0] ss:$8 sps:$4 sm:$0xff]  }
 0x111   : > { %864 = vmatpush1.bf16.msra.mxu0 %v1657_v62  ;;  %1111 = vmatpush1.bf16.msra.mxu1 %v1678_v10  ;;  %v1703_v34 = vld [vmem:[%s2103_s5 + $0xc4] ss:$8 sps:$4 sm:$0xff]   ;;  %v1705_v35 = vld [vmem:[%s2103_s5 + $0xc0] ss:$8 sps:$4 sm:$0xff]   ;;  %v1706_v36 = vld [vmem:[%s2103_s5 + $0xb4] ss:$8 sps:$4 sm:$0xff]  }
 0x112   : > { %865 = vmatprep.subr.bf16.mxu0 %v1658_v63  ;;  %1112 = vmatprep.subr.bf16.mxu1 %v1679_v12  ;;  %v1708_v37 = vld [vmem:[%s2103_s5 + $0xb0] ss:$8 sps:$4 sm:$0xff]   ;;  %v1709_v38 = vld [vmem:[%s2103_s5 + $0xa4] ss:$8 sps:$4 sm:$0xff]   ;;  %v1711_v39 = vld [vmem:[%s2103_s5 + $0xa0] ss:$8 sps:$4 sm:$0xff]  }
 0x113   : > { %v1712_v40 = vld [vmem:[%s2103_s5 + $0x94] ss:$8 sps:$4 sm:$0xff]   ;;  %v1714_v41 = vld [vmem:[%s2103_s5 + $0x90] ss:$8 sps:$4 sm:$0xff]   ;;  %v1715_v42 = vld [vmem:[%s2103_s5 + $0x84] ss:$8 sps:$4 sm:$0xff]  }
 0x114   : > { %v1717_v43 = vld [vmem:[%s2103_s5 + $0x80] ss:$8 sps:$4 sm:$0xff]   ;;  %v1718_v44 = vld [vmem:[%s2105_s7 + $0x78] sm:$0xff]   ;;  %v1720_v46 = vld [vmem:[%s2105_s7 + $0x70] sm:$0xff]   ;;  %v773_v60 = vsub.s32 1, %v768_v57 }
 0x115   : > { %866 = vmatpush1.bf16.msra.mxu0 %v1660_v3  ;;  %1113 = vmatpush1.bf16.msra.mxu1 %v1681_v15  ;;  %v1719_v45 = vld [vmem:[%s2105_s7 + $0x38] sm:$0xff]   ;;  %v1721_v47 = vld [vmem:[%s2105_s7 + $0x30] sm:$0xff]   ;;  %v1723_v49 = vld [vmem:[%s2105_s7 + $0x28] sm:$0xff]  }
 0x116   : > { %867 = vmatprep.subr.bf16.mxu0 %v1661_v5  ;;  %1114 = vmatprep.subr.bf16.mxu1 %v1682_v17  ;;  %v1724_v50 = vld [vmem:[%s2105_s7 + $0x60] sm:$0xff]   ;;  %v1726_v52 = vld [vmem:[%s2105_s7 + $0x58] sm:$0xff]   ;;  %v1728_v54 = vld [vmem:[%s2105_s7 + $0x50] sm:$0xff]  }
 0x117   : > { %v1725_v51 = vld [vmem:[%s2105_s7 + $0x20] sm:$0xff]   ;;  %v1727_v53 = vld [vmem:[%s2105_s7 + $0x18] sm:$0xff]   ;;  %v1729_v55 = vld [vmem:[%s2105_s7 + $0x10] sm:$0xff]  }
 0x118   : > { %v765_v59 = vld [vmem:[%s2102_s4] sm:$0x3]  ;;  %v1730_v9 = vld [vmem:[%s2105_s7 + $0x48] sm:$0xff]  }
 0x119   : > { %868 = vmatpush1.bf16.msra.mxu0 %v1663_v7  ;;  %1115 = vmatpush1.bf16.msra.mxu1 %v1684_v20  ;;  %v770_v61 = vrot.slane %v765_v59, %v769_v58  ;;  %v774_v62 = vrot.slane %v765_v59, %v773_v60  ;;  %v1731_v10 = vld [vmem:[%s2105_s7 + $0x8] sm:$0xff]   ;;  %v1733_v12 = vld [vmem:[%s2105_s7] sm:$0xff]  }
 0x11a   : > { %869 = vmatprep.subr.bf16.mxu0 %v1664_v11  ;;  %1116 = vmatprep.subr.bf16.mxu1 %v1685_v21  ;;  %v1732_v11 = vld [vmem:[%s2105_s7 + $0x40] sm:$0xff]  }
 0x11d   : > { %870 = vmatpush1.bf16.msra.mxu0 %v1666_v13  ;;  %1117 = vmatpush1.bf16.msra.mxu1 %v1687_v22  ;;  %v934_v13 = vld [vmem:[%s2104_s6] sm:$0x3] }
 0x11e   : > { %871 = vmatprep.subr.bf16.mxu0 %v1667_v16  ;;  %1118 = vmatprep.subr.bf16.mxu1 %v1688_v24  ;;  %v939_v14 = vrot.slane %v934_v13, %v769_v58  ;;  %v943_v15 = vrot.slane %v934_v13, %v773_v60 }
 0x121   : > { %872 = vmatpush1.bf16.msra.mxu0 %v1669_v18  ;;  %1119 = vmatpush1.bf16.msra.mxu1 %v1690_v25 }
 0x122   : > { %1120 = vmatprep.subr.bf16.mxu1 %v1691_v26  ;;  %1566 = vmatprep.subr.bf16.mxu0 %v1718_v44 }
 0x124   : > { %890 = vmatmul.mubr.bf16.vlgmr.msra.gmra.mxu0 %v748_v23 }
 0x125   : > { %1121 = vmatpush1.bf16.msra.mxu1 %v1693_v27  ;;  %1567 = vmatpush3.bf16.msra.mxu0 %v1719_v45 }
 0x126   : > { %1122 = vmatprep.subr.bf16.mxu1 %v1694_v28  ;;  %1568 = vmatprep.subr.bf16.mxu0 %v1720_v46  ;;  %v1502_v28 = vld [vmem:[%s2106_s8] ss:$0 sm:$0xff] }
 0x129   : > { %1123 = vmatpush2.bf16.msra.mxu1 %v1696_v29  ;;  %1569 = vmatpush3.bf16.msra.mxu0 %v1721_v47 }
 0x12a   : > { %1124 = vmatprep.subr.bf16.mxu1 %v1697_v30  ;;  %1570 = vmatprep.subr.bf16.mxu0 %v1722_v48 }
 0x12d   : > { %1125 = vmatpush2.bf16.msra.mxu1 %v1699_v31  ;;  %1571 = vmatpush3.bf16.msra.mxu0 %v1723_v49 }
 0x12e   : > { %1126 = vmatprep.subr.bf16.mxu1 %v1700_v32  ;;  %1572 = vmatprep.subr.bf16.mxu0 %v1724_v50 }
 0x131   : > { %1127 = vmatpush2.bf16.msra.mxu1 %v1702_v33  ;;  %1573 = vmatpush3.bf16.msra.mxu0 %v1725_v51 }
 0x132   : > { %1128 = vmatprep.subr.bf16.mxu1 %v1703_v34  ;;  %1574 = vmatprep.subr.bf16.mxu0 %v1726_v52 }
 0x135   : > { %1129 = vmatpush2.bf16.msra.mxu1 %v1705_v35  ;;  %1575 = vmatpush3.bf16.msra.mxu0 %v1727_v53 }
 0x136   : > { %1130 = vmatprep.subr.bf16.mxu1 %v1706_v36  ;;  %1576 = vmatprep.subr.bf16.mxu0 %v1728_v54 }
 0x139   : > { %1131 = vmatpush2.bf16.msra.mxu1 %v1708_v37  ;;  %1577 = vmatpush3.bf16.msra.mxu0 %v1729_v55 }
 0x13a   : > { %1132 = vmatprep.subr.bf16.mxu1 %v1709_v38  ;;  %1578 = vmatprep.subr.bf16.mxu0 %v1730_v9 }
 0x13d   : > { %1133 = vmatpush2.bf16.msra.mxu1 %v1711_v39  ;;  %1579 = vmatpush3.bf16.msra.mxu0 %v1731_v10 }
 0x13e   : > { %1134 = vmatprep.subr.bf16.mxu1 %v1712_v40  ;;  %1580 = vmatprep.subr.bf16.mxu0 %v1732_v11 }
 0x141   : > { %1135 = vmatpush2.bf16.msra.mxu1 %v1714_v41  ;;  %1581 = vmatpush3.bf16.msra.mxu0 %v1733_v12 }
 0x142   : > { %1136 = vmatprep.subr.bf16.mxu1 %v1715_v42 }
 0x145   : > { %1137 = vmatpush2.bf16.msra.mxu1 %v1717_v43 }
 0x1e4   : > { %v891_v63 = vpop.f32.mrf.mxu0 }
 0x1e5   : > { %v892_v0 = vadd.f32 %v891_v63, %v770_v61 }
 0x1e6   : > { %v893_v1 = vpop.f32.mrf.mxu0 }
 0x1e7   : > { %v894_v2 = vadd.f32 %v893_v1, %v774_v62  ;;  %v898_v3 = vmax.f32 %v892_v0, 0.0 }
 0x1e8   : > { %v895_v4 = vpop.f32.mrf.mxu0 }
 0x1e9   : > { %v899_v5 = vmax.f32 %v894_v2, 0.0  ;;  %v900_v8 = vpack.c.bf16 %v898_v3, %v898_v3 }
 0x1ea   : > { %v896_v6 = vpop.f32.mrf.mxu0 }
 0x1eb   : > { %v901_v7 = vpack.c.bf16 %v899_v5, %v899_v5 }
 0x1ed   : > { %1138 = vmatprep.mubr.bf16.mxu1 %v901_v7 }
 0x1ee   : > { %1139 = vmatmul.mubr.bf16.vlgmr.msra.gmra.mxu1 %v900_v8 }
 0x2ae   : > { %v1140_v16 = vpop.f32.mrf.mxu1 }
 0x2af   : > { %v1141_v17 = vadd.f32 %v1140_v16, %v939_v14 }
 0x2b0   : > { %v1142_v18 = vpop.f32.mrf.mxu1 }
 0x2b1   : > { %v1143_v19 = vadd.f32 %v1142_v18, %v943_v15  ;;  %v1147_v20 = vmax.f32 %v1141_v17, 0.0 }
 0x2b2   : > { %v1144_v21 = vpop.f32.mrf.mxu1 }
 0x2b3   : > { %v1148_v22 = vmax.f32 %v1143_v19, 0.0  ;;  %v1149_v25 = vpack.c.bf16 %v1147_v20, %v1147_v20 }
 0x2b4   : > { %v1145_v23 = vpop.f32.mrf.mxu1 }
 0x2b5   : > { %v1150_v24 = vpack.c.bf16 %v1148_v22, %v1148_v22 }
 0x2b7   : > { %1318 = vmatprep.mubr.bf16.mxu0 %v1150_v24 }
 0x2b8   : > { %1319 = vmatmul.mubr.bf16.vlgmr.msra.gmra.mxu0 %v1149_v25 }
 0x378   : > { %v1582_v26 = vpop.f32.mrf.mxu0 }
 0x37a   : > { %v1583_v27 = vpop.f32.mrf.mxu0 }
 0x37b   : > { %v1584_v29 = vadd.f32 %v1583_v27, %v1582_v26 }
 0x37c   : > { %v1585_v30 = vpop.f32.mrf.mxu0 }
 0x37d   : > { %v1321_v31 = vadd.f32 %v1584_v29, %v1502_v28 }
 0x37e   : > { %v1586_v32 = vpop.f32.mrf.mxu0 }
 0x37f   : > { %v1326_v33 = vmax.f32 %v1321_v31, 0.0 }
 0x381   : > { %v1327_v34 = vmul.f32 %v1326_v33, %v1326_v33 }
 0x383   : > { %1328 = vadd.xlane.f32.xlu0 %v1327_v34 }
 0x40c   : > { %v1329_v35 = vpop.xlane.xlu0 %1328 }
 0x40d   : > { %v1330_v36 = vmax.f32 %v1329_v35, 1e-24 }
 0x40f   : > { %1734 = vrsqrt.f32 %v1330_v36 }
 0x41c   : > { %v1735_v37 = vpop.eup %1734 }
 0x41d   : > { %v1332_v38 = vmul.f32 %v1735_v37, %v1326_v33 }
 0x41f   : > { %1333 = vst [vmem:[%s2107_s9] sm:$0xff] %v1332_v38 }
 0x420 PF: > { %s19_s11 = sadd.s32 1, %s1758_s11   ;;  %s2108_s30 = smov %s1754_s10 }
 0x421   : > { %p16_p8 = scmp.ge.s32.totalorder %s19_s11, 4   ;;  %s2109_s10 = smov %s2111_s12 }
 0x423   :  { %18 = sbr.rel (!%p16_p8) target bundleno = 2 (0x2), region = 97 }

</bundles_post_ra>
